<compile_context>
chip_gen: v5e
topology: v5e:2x2
jax: 0.10.0
libtpu: 0.0.40
codegen_flags: <defaults>
</compile_context>

<pallas_src>
import functools

import numpy as np
import jax
import jax.numpy as jnp
from jax.experimental import pallas as pl
from jax.experimental.pallas import tpu as pltpu

# pywt.Wavelet('db4').filter_bank decomposition filters, hardcoded (no pywt dep).
WAVELET_DEC_LO = np.array(
    [-0.010597401784997278, 0.032883011666982945, 0.030841381835986965,
     -0.18703481171888114, -0.02798376941698385, 0.6308807679295904,
     0.7148465705525415, 0.23037781330885523], dtype=np.float64)
WAVELET_DEC_HI = np.array(
    [-0.23037781330885523, 0.7148465705525415, -0.6308807679295904,
     -0.02798376941698385, 0.18703481171888114, 0.030841381835986965,
     -0.032883011666982945, -0.010597401784997278], dtype=np.float64)

LEVEL = 5
K = WAVELET_DEC_LO.shape[0]          # 8 taps
PAD = K // 2                         # 4 (applied once, reflect, like the torch code)


def _round_up(x, m):
    return (x + m - 1) // m * m


def _coeff_lengths(T, level):
    """lens[0] = padded input length, lens[i] = length of level-i coefficients."""
    lens = [T + 2 * PAD]
    for _ in range(level):
        assert lens[-1] >= K, "signal too short for requested wavelet level"
        lens.append((lens[-1] - K) // 2 + 1)
    return lens


def _band_matrix(filt, l_in, l_out):
    """Banded matrix M with M[2n+k, n] = filt[k]: x @ M == conv1d(x, filt, stride=2)."""
    m = np.zeros((l_in, l_out), dtype=np.float64)
    for n in range(l_out):
        m[2 * n:2 * n + K, n] = filt
    return m


def _build_cascade_operator(lens, npad):
    """Collapse the whole level cascade into one (L0, npad) operator.

    Column band l holds  Mlo_0 @ ... @ Mlo_{l-1} @ Mhi_l, i.e. x_padded @ W
    produces every level's high-pass coefficients, concatenated along lanes.
    Columns >= sum(lens[1:]) are exactly zero.
    """
    level = len(lens) - 1
    w = np.zeros((lens[0], npad), dtype=np.float64)
    low_chain = np.eye(lens[0], dtype=np.float64)
    off = 0
    for l in range(level):
        w[:, off:off + lens[l + 1]] = (
            low_chain @ _band_matrix(WAVELET_DEC_HI, lens[l], lens[l + 1]))
        low_chain = low_chain @ _band_matrix(WAVELET_DEC_LO, lens[l], lens[l + 1])
        off += lens[l + 1]
    return w.astype(np.float32)


def _wavelet_kernel(x_ref, w_ref, out_ref, *, n_total):
    """x_ref: (B, L0) f32; w_ref: (L0, Npad) f32; out_ref: (B, Npad) f32."""
    # Single MXU pass: all 5 levels of detail coefficients at once (lane-dense).
    flat = jnp.dot(x_ref[...], w_ref[...], preferred_element_type=jnp.float32)

    # Running sum / sum-of-squares over the valid coefficients (padded columns
    # of W are exactly 0, so they contribute nothing to either accumulator).
    total = jnp.sum(flat)
    total_sq = jnp.sum(flat * flat)
    mean = total / n_total
    var = (total_sq - n_total * mean * mean) / (n_total - 1.0)   # unbiased (torch.std)
    std = jnp.sqrt(jnp.maximum(var, 0.0))

    # EUP approximate reciprocal; (1,1)-shaped so it is a vector-unit operand.
    denom = jnp.full((1, 1), std + 1e-6, dtype=jnp.float32)
    inv = pl.reciprocal(denom, approx=True)

    scale = inv                    # (1, 1)
    shift = mean * inv             # (1, 1)
    out_ref[...] = flat * scale - shift   # lanes are a multiple of 128 -> unmasked stores


def wavelet_transform(x, level=LEVEL):
    """x: (B, 1, T) float32 (NCT, like the torch module). Returns (B, level, 1, L1)."""
    B, C, T = x.shape
    assert C == 1, "WaveletTransform expects a single channel"
    lens = _coeff_lengths(T, level)
    L0 = lens[0]
    n_valid = sum(lens[1:])
    npad = _round_up(n_valid, 128)   # 256 for T=256 -> one full 256-wide MXU pass

    # glue: reflect pad + squeeze channel (matches F.pad(..., mode='reflect'))
    xp = jnp.pad(x, ((0, 0), (0, 0), (PAD, PAD)), mode="reflect")[:, 0, :]
    xp = xp.astype(jnp.float32)

    w = jnp.asarray(_build_cascade_operator(lens, npad))          # (L0, npad) ~264 KB

    n_total = float(B * n_valid)     # number of real (non-padded) coefficients
    kernel = functools.partial(_wavelet_kernel, n_total=n_total)

    # TODO(synk): for large B, add a batch grid (BlockSpec((B_tile, L0), ...),
    # dimension_semantics=('parallel',)) with a two-pass mean/std; at B=2 a
    # single VMEM-resident invocation is fastest.
    flat = pl.pallas_call(
        kernel,
        out_shape=jax.ShapeDtypeStruct((B, npad), jnp.float32),
        in_specs=[pl.BlockSpec(memory_space=pltpu.MemorySpace.VMEM)] * 2,
        out_specs=pl.BlockSpec(memory_space=pltpu.MemorySpace.VMEM),
    )(xp, w)

    # glue (tiny): split the lane-dense coefficients back into per-level slices,
    # zero-pad each to the level-1 length and stack -> (B, level, 1, L1).
    l1 = lens[1]
    parts = []
    off = 0
    for l in range(level):
        ln = lens[l + 1]
        c = flat[:, off:off + ln]
        parts.append(jnp.pad(c, ((0, 0), (0, l1 - ln))))
        off += ln
    return jnp.stack(parts, axis=1)[:, :, None, :]


def _reference(x, level=LEVEL):
    """Pure-JAX reference of the (intended) torch forward, per-level coefficients."""
    lo = jnp.asarray(WAVELET_DEC_LO, dtype=jnp.float32)
    hi = jnp.asarray(WAVELET_DEC_HI, dtype=jnp.float32)
    cur = jnp.pad(x, ((0, 0), (0, 0), (PAD, PAD)), mode="reflect")[:, 0, :]
    coeffs = []
    for _ in range(level):
        l_in = cur.shape[1]
        l_out = (l_in - K) // 2 + 1
        idx = 2 * np.arange(l_out)[:, None] + np.arange(K)[None, :]
        win = cur[:, idx]                       # (B, l_out, K)
        coeffs.append(win @ hi)
        cur = win @ lo
    flat = jnp.concatenate([c.reshape(-1) for c in coeffs])
    mean = flat.mean()
    std = jnp.std(flat, ddof=1)
    return [(c - mean) / (std + 1e-6) for c in coeffs]


if __name__ == "__main__":
    B, T = 2, 256
    key = jax.random.PRNGKey(0)
    x = jax.random.normal(key, (B, 1, T), dtype=jnp.float32)

    out = wavelet_transform(x, level=LEVEL)
    out = jax.block_until_ready(out)

    # correctness check against a plain-JAX reference
    lens = _coeff_lengths(T, LEVEL)
    ref_coeffs = _reference(x, LEVEL)
    ok = out.shape == (B, LEVEL, 1, lens[1])
    for l in range(LEVEL):
        got = out[:, l, 0, :lens[l + 1]]
        ok = ok and bool(jnp.allclose(got, ref_coeffs[l], atol=4e-3, rtol=2e-3))
        ok = ok and bool(jnp.all(out[:, l, 0, lens[l + 1]:] == 0.0))
    if not ok:
        raise AssertionError("Pallas wavelet kernel does not match reference")

    print("KERNEL_OK")
</pallas_src>

<mosaic_0001>
module attributes {stable_mosaic.version = 11 : i64} {
  func.func @_wavelet_kernel(%arg0: memref<2x264xf32, #tpu.memory_space<vmem>>, %arg1: memref<264x256xf32, #tpu.memory_space<vmem>>, %arg2: memref<2x256xf32, #tpu.memory_space<vmem>>) attributes {dimension_semantics = [], scalar_prefetch = 0 : i64, scratch_operands = 0 : i64, tpu.core_type = #tpu.core_type<tc>} {
    %c0 = arith.constant 0 : index
    %c0_0 = arith.constant 0 : index
    %0 = vector.load %arg0[%c0, %c0_0] : memref<2x264xf32, #tpu.memory_space<vmem>>, vector<2x264xf32>
    %c0_1 = arith.constant 0 : index
    %c0_2 = arith.constant 0 : index
    %1 = vector.load %arg1[%c0_1, %c0_2] : memref<264x256xf32, #tpu.memory_space<vmem>>, vector<264x256xf32>
    %cst = arith.constant dense<0.000000e+00> : vector<2x256xf32>
    %2 = tpu.matmul %0, %1, %cst {dimension_numbers = #tpu.dot_dimension_numbers<[1], [0], [0], [1], [0, 0, 1, 1], [], []>} : vector<2x264xf32>, vector<264x256xf32>, vector<2x256xf32> -> vector<2x256xf32>
    %3 = vector.shape_cast %2 : vector<2x256xf32> to vector<1x2x256xf32>
    %cst_3 = arith.constant dense<0.000000e+00> : vector<1xf32>
    %4 = vector.multi_reduction <add>, %3, %cst_3 [1, 2] : vector<1x2x256xf32> to vector<1xf32>
    %5 = vector.shape_cast %4 : vector<1xf32> to vector<1x1x1xf32>
    %6 = vector.extract %5[0, 0, 0] : f32 from vector<1x1x1xf32>
    %7 = arith.mulf %2, %2 : vector<2x256xf32>
    %8 = vector.shape_cast %7 : vector<2x256xf32> to vector<1x2x256xf32>
    %cst_4 = arith.constant dense<0.000000e+00> : vector<1xf32>
    %9 = vector.multi_reduction <add>, %8, %cst_4 [1, 2] : vector<1x2x256xf32> to vector<1xf32>
    %10 = vector.shape_cast %9 : vector<1xf32> to vector<1x1x1xf32>
    %11 = vector.extract %10[0, 0, 0] : f32 from vector<1x1x1xf32>
    %cst_5 = arith.constant 4.580000e+02 : f32
    %12 = arith.divf %6, %cst_5 : f32
    %cst_6 = arith.constant 4.580000e+02 : f32
    %13 = arith.mulf %cst_6, %12 : f32
    %14 = arith.mulf %13, %12 : f32
    %15 = arith.subf %11, %14 : f32
    %cst_7 = arith.constant 4.570000e+02 : f32
    %16 = arith.divf %15, %cst_7 : f32
    %cst_8 = arith.constant 0.000000e+00 : f32
    %17 = arith.maximumf %16, %cst_8 : f32
    %18 = math.sqrt %17 : f32
    %cst_9 = arith.constant 9.99999997E-7 : f32
    %19 = arith.addf %18, %cst_9 : f32
    %20 = vector.broadcast %19 : f32 to vector<1x1xf32>
    %21 = tpu.reciprocal %20 {approx = true} : vector<1x1xf32> -> vector<1x1xf32>
    %22 = vector.broadcast %12 : f32 to vector<1x1xf32>
    %23 = arith.mulf %22, %21 : vector<1x1xf32>
    %24 = vector.broadcast %21 : vector<1x1xf32> to vector<2x256xf32>
    %25 = arith.mulf %2, %24 : vector<2x256xf32>
    %26 = vector.broadcast %23 : vector<1x1xf32> to vector<2x256xf32>
    %27 = arith.subf %25, %26 : vector<2x256xf32>
    %c0_10 = arith.constant 0 : index
    %c0_11 = arith.constant 0 : index
    %28 = vector.load %arg2[%c0_10, %c0_11] : memref<2x256xf32, #tpu.memory_space<vmem>>, vector<2x256xf32>
    tpu.vector_store %arg2[%c0_10, %c0_11], %27 {strides = array<i32>} : memref<2x256xf32, #tpu.memory_space<vmem>>, vector<2x256xf32>,
    return
  }
}

</mosaic_0001>

<bundles_post_ra>
// kernel: tpu_custom_call.1
= control target key start
LH: loop header
LB: loop body
LE: loop exit
PB: predicated region body
PF: predicated region fallthrough
CT: control target
= control target key end

     0   :  { %7 = vsyncpa [#allocation3], 0  ;;  %s492_s0 = inlined_call_operand.hbm [shape: f32[2,264], index: 0, kind: input, shape index: {}]   ;;  %s493_s1 = inlined_call_operand.hbm [shape: f32[264,256], index: 1, kind: input, shape index: {}]   ;;  %s494_s2 = inlined_call_operand.hbm [shape: f32[2,256], index: 2, kind: output, shape index: {}]  }
   0x1   :  { %8 = vsyncpa [#allocation6], 0 }
   0x2   :  { %9 = vsyncpa [#allocation4], 0  ;;  %s15_s11 = sshll.u32 %s492_s0, 4  ;;  %s441_s12 = smov [#allocation2]   ;;  %s16_s11 = int_to_ptr.hbm [resolvable:$true] %s15_s11 }
   0x3   :  { %s17_s13 = sshll.u32 %s441_s12, 4  ;;  %s25_s16 = sshll.u32 %s493_s1, 4  ;;  %s18_s13 = int_to_ptr.vmem [resolvable:$true] %s17_s13  ;;  %s26_s16 = int_to_ptr.hbm [resolvable:$true] %s25_s16 }
   0x4   :  { %20 = dma.hbm_to_vmem [thread:$0]  %s16_s11, 96, %s18_s13, [#allocation3]  }
   0x5   :  { %s442_s17 = smov [#allocation5]   ;;  %s443_s19 = smov 256  }
   0x6   :  { %s27_s18 = sshll.u32 %s442_s17, 4  ;;  %s444_s20 = smov 16   ;;  %s28_s18 = int_to_ptr.vmem [resolvable:$true] %s27_s18 }
   0x7   :  { %33 = dma.hbm_to_vmem [thread:$0]  %s26_s16, 8448, %s28_s18, [#allocation6], %s443_s19, %s443_s19, %s444_s20  }
   0x8   :  { %435 = dma.done.wait [#allocation3], 96  }
   0x9   :  { %436 = vsyncadd [#allocation3], 4294967200 }
   0xa   :  { %437 = dma.done.wait [#allocation6], 8448  }
   0xb   :  { %438 = vsyncadd [#allocation6], 4294958848  ;;  %v73_v0 = vld [vmem:[#allocation5 + $0xf0] sm:$0xff]  ;;  %v107_v2 = vld [vmem:[#allocation5 + $0x200] sm:$0xff]  ;;  %vm116_vm0 = vcmask 64512   ;;  %vm239_vm1 = vcmask 1041408  }
   0xc   :  { %v105_v1 = vld [vmem:[#allocation5 + $0x1f0] sm:$0xff]  ;;  %119 = vmatpush.msra.mxu0 %v73_v0  ;;  %v74_v3 = vld [vmem:[#allocation5 + $0xf8] sm:$0xff]  ;;  %v71_v5 = vld [vmem:[#allocation5 + $0xe0] sm:$0xff]  ;;  %174 = vmatpush.msra.mxu2 %v107_v2  ;;  %s447_s28 = smov 0.0   ;;  %s448_s4 = smov [#allocation7]  }
   0xd   :  { %139 = vmatpush.msra.mxu1 %v105_v1  ;;  %v106_v4 = vld [vmem:[#allocation5 + $0x1f8] sm:$0xff]  ;;  %179 = vmatpush.msra.mxu3 %v74_v3  ;;  %v103_v6 = vld [vmem:[#allocation5 + $0x1e0] sm:$0xff]  ;;  %v72_v7 = vld [vmem:[#allocation5 + $0xe8] sm:$0xff]  ;;  %s322_s5 = sshll.u32 %s448_s4, 4  ;;  %s324_s8 = sshll.u32 %s494_s2, 4  ;;  %s323_s5 = int_to_ptr.vmem [resolvable:$true] %s322_s5  ;;  %s325_s8 = int_to_ptr.hbm [resolvable:$true] %s324_s8 }
   0xe   :  { %v104_v8 = vld [vmem:[#allocation5 + $0x1e8] sm:$0xff]  ;;  %199 = vmatpush.msrb.mxu2 %v106_v4  ;;  %120 = vmatpush.msra.mxu0 %v71_v5  ;;  %v69_v9 = vld [vmem:[#allocation5 + $0xd0] sm:$0xff]  ;;  %v70_v11 = vld [vmem:[#allocation5 + $0xd8] sm:$0xff] }
   0xf   :  { %v101_v10 = vld [vmem:[#allocation5 + $0x1d0] sm:$0xff]  ;;  %140 = vmatpush.msra.mxu1 %v103_v6  ;;  %180 = vmatpush.msra.mxu3 %v72_v7  ;;  %v102_v12 = vld [vmem:[#allocation5 + $0x1d8] sm:$0xff]  ;;  %v67_v13 = vld [vmem:[#allocation5 + $0xc0] sm:$0xff] }
  0x10   :  { %200 = vmatpush.msrb.mxu2 %v104_v8  ;;  %121 = vmatpush.msra.mxu0 %v69_v9  ;;  %v99_v14 = vld [vmem:[#allocation5 + $0x1c0] sm:$0xff]  ;;  %v68_v15 = vld [vmem:[#allocation5 + $0xc8] sm:$0xff]  ;;  %v65_v17 = vld [vmem:[#allocation5 + $0xb0] sm:$0xff] }
  0x11   :  { %141 = vmatpush.msra.mxu1 %v101_v10  ;;  %181 = vmatpush.msra.mxu3 %v70_v11  ;;  %v100_v16 = vld [vmem:[#allocation5 + $0x1c8] sm:$0xff]  ;;  %v97_v18 = vld [vmem:[#allocation5 + $0x1b0] sm:$0xff]  ;;  %v66_v19 = vld [vmem:[#allocation5 + $0xb8] sm:$0xff] }
  0x12   :  { %201 = vmatpush.msrb.mxu2 %v102_v12  ;;  %122 = vmatpush.msra.mxu0 %v67_v13  ;;  %v98_v20 = vld [vmem:[#allocation5 + $0x1b8] sm:$0xff]  ;;  %v63_v21 = vld [vmem:[#allocation5 + $0xa0] sm:$0xff]  ;;  %v64_v23 = vld [vmem:[#allocation5 + $0xa8] sm:$0xff] }
  0x13   :  { %142 = vmatpush.msra.mxu1 %v99_v14  ;;  %182 = vmatpush.msra.mxu3 %v68_v15  ;;  %v95_v22 = vld [vmem:[#allocation5 + $0x1a0] sm:$0xff]  ;;  %v96_v24 = vld [vmem:[#allocation5 + $0x1a8] sm:$0xff]  ;;  %v61_v25 = vld [vmem:[#allocation5 + $0x90] sm:$0xff] }
  0x14   :  { %202 = vmatpush.msrb.mxu2 %v100_v16  ;;  %123 = vmatpush.msra.mxu0 %v65_v17  ;;  %v93_v26 = vld [vmem:[#allocation5 + $0x190] sm:$0xff]  ;;  %v62_v27 = vld [vmem:[#allocation5 + $0x98] sm:$0xff]  ;;  %v59_v29 = vld [vmem:[#allocation5 + $0x80] sm:$0xff] }
  0x15   :  { %143 = vmatpush.msra.mxu1 %v97_v18  ;;  %183 = vmatpush.msra.mxu3 %v66_v19  ;;  %v94_v28 = vld [vmem:[#allocation5 + $0x198] sm:$0xff]  ;;  %v91_v30 = vld [vmem:[#allocation5 + $0x180] sm:$0xff]  ;;  %v60_v31 = vld [vmem:[#allocation5 + $0x88] sm:$0xff] }
  0x16   :  { %203 = vmatpush.msrb.mxu2 %v98_v20  ;;  %124 = vmatpush.msra.mxu0 %v63_v21  ;;  %v92_v32 = vld [vmem:[#allocation5 + $0x188] sm:$0xff]  ;;  %v57_v33 = vld [vmem:[#allocation5 + $0x70] sm:$0xff]  ;;  %v58_v35 = vld [vmem:[#allocation5 + $0x78] sm:$0xff] }
  0x17   :  { %144 = vmatpush.msra.mxu1 %v95_v22  ;;  %184 = vmatpush.msra.mxu3 %v64_v23  ;;  %v89_v34 = vld [vmem:[#allocation5 + $0x170] sm:$0xff]  ;;  %v90_v36 = vld [vmem:[#allocation5 + $0x178] sm:$0xff]  ;;  %v55_v37 = vld [vmem:[#allocation5 + $0x60] sm:$0xff] }
  0x18   :  { %204 = vmatpush.msrb.mxu2 %v96_v24  ;;  %125 = vmatpush.msra.mxu0 %v61_v25  ;;  %v87_v38 = vld [vmem:[#allocation5 + $0x160] sm:$0xff]  ;;  %v56_v39 = vld [vmem:[#allocation5 + $0x68] sm:$0xff]  ;;  %v42_v40 = vld [vmem:[#allocation2] sm:$0x3f]  ;;  %v445_v24 = vmov 458.0   ;;  %v446_v25 = vmov 457.0  }
  0x19   :  { %145 = vmatpush.msra.mxu1 %v93_v26  ;;  %185 = vmatpush.msra.mxu3 %v62_v27  ;;  %v88_v41 = vld [vmem:[#allocation5 + $0x168] sm:$0xff]  ;;  %v53_v42 = vld [vmem:[#allocation5 + $0x50] sm:$0xff]  ;;  %110 = vst [vmem:[#allocation1] ss:$4 sm:$0xff] %v42_v40  ;;  %v54_v44 = vld [vmem:[#allocation5 + $0x58] sm:$0xff]  ;;  %355 = vrcp.f32 %v445_v24 }
  0x1a   :  { %205 = vmatpush.msrb.mxu2 %v94_v28  ;;  %126 = vmatpush.msra.mxu0 %v59_v29  ;;  %v85_v43 = vld [vmem:[#allocation5 + $0x150] sm:$0xff]  ;;  %v86_v45 = vld [vmem:[#allocation5 + $0x158] sm:$0xff]  ;;  %v51_v46 = vld [vmem:[#allocation5 + $0x40] sm:$0xff]  ;;  %357 = vrcp.f32 %v446_v25 }
  0x1b   :  { %146 = vmatpush.msra.mxu1 %v91_v30  ;;  %186 = vmatpush.msra.mxu3 %v60_v31  ;;  %v83_v47 = vld [vmem:[#allocation5 + $0x140] sm:$0xff]  ;;  %v52_v48 = vld [vmem:[#allocation5 + $0x48] sm:$0xff]  ;;  %v49_v50 = vld [vmem:[#allocation5 + $0x30] sm:$0xff] }
  0x1c   :  { %206 = vmatpush.msrb.mxu2 %v92_v32  ;;  %127 = vmatpush.msra.mxu0 %v57_v33  ;;  %v84_v49 = vld [vmem:[#allocation5 + $0x148] sm:$0xff]  ;;  %v81_v51 = vld [vmem:[#allocation5 + $0x130] sm:$0xff]  ;;  %v50_v52 = vld [vmem:[#allocation5 + $0x38] sm:$0xff] }
  0x1d   :  { %147 = vmatpush.msra.mxu1 %v89_v34  ;;  %187 = vmatpush.msra.mxu3 %v58_v35  ;;  %v82_v53 = vld [vmem:[#allocation5 + $0x138] sm:$0xff]  ;;  %v47_v55 = vld [vmem:[#allocation5 + $0x20] sm:$0xff]  ;;  %v48_v57 = vld [vmem:[#allocation5 + $0x28] sm:$0xff] }
  0x1e   :  { %207 = vmatpush.msrb.mxu2 %v90_v36  ;;  %128 = vmatpush.msra.mxu0 %v55_v37  ;;  %v79_v56 = vld [vmem:[#allocation5 + $0x120] sm:$0xff]  ;;  %v80_v58 = vld [vmem:[#allocation5 + $0x128] sm:$0xff]  ;;  %v45_v59 = vld [vmem:[#allocation5 + $0x10] sm:$0xff] }
  0x1f   :  { %148 = vmatpush.msra.mxu1 %v87_v38  ;;  %188 = vmatpush.msra.mxu3 %v56_v39  ;;  %v77_v60 = vld [vmem:[#allocation5 + $0x110] sm:$0xff]  ;;  %v46_v61 = vld [vmem:[#allocation5 + $0x18] sm:$0xff]  ;;  %v43_v63 = vld [vmem:[#allocation5] sm:$0xff]  ;;  %v356_v26 = vpop.eup %355 }
  0x20   :  { %208 = vmatpush.msrb.mxu2 %v88_v41  ;;  %129 = vmatpush.msra.mxu0 %v53_v42  ;;  %v113_v54 = vld.sshfl [vmem:[#allocation1 + $0x10] sm:$0xff pattern:$0x73625140]  ;;  %v78_v62 = vld [vmem:[#allocation5 + $0x118] sm:$0xff]  ;;  %v358_v28 = vpop.eup %357  ;;  %v267_v31 = vmul.f32 458.0, %v356_v26  ;;  %vm271_vm2 = vweird.f32 %v356_v26 }
  0x21   :  { %149 = vmatpush.msra.mxu1 %v85_v43  ;;  %189 = vmatpush.msra.mxu3 %v54_v44  ;;  %v75_v0 = vld [vmem:[#allocation5 + $0x100] sm:$0xff]  ;;  %v111_v1 = vld.sshfl [vmem:[#allocation1] sm:$0xff pattern:$0x73625140]  ;;  %v44_v3 = vld [vmem:[#allocation5 + $0x8] sm:$0xff]  ;;  %v279_v32 = vmul.f32 457.0, %v358_v28  ;;  %vm283_vm3 = vweird.f32 %v358_v28 }
  0x22   :  { %209 = vmatpush.msrb.mxu2 %v86_v45  ;;  %130 = vmatpush.msra.mxu0 %v51_v46  ;;  %v112_v2 = vld.sshfl [vmem:[#allocation1 + $0x8] sm:$0xff pattern:$0x73625140]  ;;  %v76_v4 = vld [vmem:[#allocation5 + $0x108] sm:$0xff]  ;;  %v268_v35 = vsub.f32 1.0, %v267_v31 }
  0x23   :  { %150 = vmatpush.msra.mxu1 %v83_v47  ;;  %190 = vmatpush.msra.mxu3 %v52_v48  ;;  %v108_v5 = vld [vmem:[#allocation5 + $0x208] sm:$0xff]  ;;  %v280_v37 = vsub.f32 1.0, %v279_v32 }
  0x24   :  { %210 = vmatpush.msrb.mxu2 %v84_v49  ;;  %131 = vmatpush.msra.mxu0 %v49_v50  ;;  %v269_v42 = vmul.f32 %v356_v26, %v268_v35 }
  0x25   :  { %151 = vmatpush.msra.mxu1 %v81_v51  ;;  %335 = vmatmul.msk.f32.vlgmr.msra.gmra.mxu2 %vm116_vm0, %v113_v54  ;;  %v281_v43 = vmul.f32 %v358_v28, %v280_v37 }
  0x26   :  { %191 = vmatpush.msra.mxu3 %v50_v52  ;;  %211 = vmatpush.msrb.mxu2 %v82_v53  ;;  %v270_v46 = vadd.f32 %v356_v26, %v269_v42 }
  0x27   :  { %132 = vmatpush.msra.mxu0 %v47_v55  ;;  %152 = vmatpush.msra.mxu1 %v79_v56  ;;  %v282_v47 = vadd.f32 %v358_v28, %v281_v43 }
  0x28   :  { %192 = vmatpush.msra.mxu3 %v48_v57  ;;  %212 = vmatpush.msrb.mxu2 %v80_v58  ;;  %v272_v50 = vsel %vm271_vm2, %v356_v26, %v270_v46 }
  0x29   :  { %133 = vmatpush.msra.mxu0 %v45_v59  ;;  %153 = vmatpush.msra.mxu1 %v77_v60  ;;  %v284_v51 = vsel %vm283_vm3, %v358_v28, %v282_v47 }
  0x2a   :  { %193 = vmatpush.msra.mxu3 %v46_v61  ;;  %213 = vmatpush.msrb.mxu2 %v78_v62 }
  0x2b   :  { %134 = vmatpush.msra.mxu0 %v43_v63  ;;  %154 = vmatpush.msra.mxu1 %v75_v0 }
  0x2c   :  { %135 = vmatmul.f32.vlgmr.msra.gmra.mxu0 %v111_v1  ;;  %155 = vmatmul.f32.vlgmr.msra.gmra.mxu1 %v112_v2 }
  0x2d   :  { %194 = vmatpush.msra.mxu3 %v44_v3  ;;  %214 = vmatpush.msrb.mxu2 %v76_v4 }
  0x2e   :  { %195 = vmatmul.f32.vlgmr.msra.gmra.mxu3 %v111_v1  ;;  %215 = vmatmul.f32.vlgmr.msrb.gmra.mxu2 %v112_v2 }
  0x2f   :  { %234 = vmatpush.msrb.mxu0 %v108_v5 }
  0x34   :  { %336 = vmatmul.msk.f32.vlgmr.msrb.gmra.mxu0 %vm116_vm0, %v113_v54 }
  0xa8   :  { %v176_v6 = vpop.f32.mrf.mxu2 }
  0xa9   :  { %v136_v7 = vpop.f32.mrf.mxu0  ;;  %v156_v8 = vpop.f32.mrf.mxu1 }
  0xaa   :  { %v157_v9 = vadd.f32 %v156_v8, %v136_v7 }
  0xac   :  { %v472_v12 = vadd.f32 %v176_v6, %v157_v9 }
  0xae   :  { %v240_v16 = vsel %vm239_vm1, %v472_v12, 0.0  ;;  %v252_v20 = vmul.f32 %v472_v12, %v472_v12 }
  0xb0   :  { %v254_v22 = vsel %vm239_vm1, %v252_v20, 0.0 }
  0xb1   :  { %v196_v10 = vpop.f32.mrf.mxu3  ;;  %v216_v11 = vpop.f32.mrf.mxu2 }
  0xb2   :  { %v217_v13 = vadd.f32 %v216_v11, %v196_v10  ;;  %v236_v14 = vpop.f32.mrf.mxu0 }
  0xb4   :  { %v474_v15 = vadd.f32 %v236_v14, %v217_v13 }
  0xb6   :  { %v241_v17 = vsel %vm239_vm1, %v474_v15, 0.0  ;;  %v253_v19 = vmul.f32 %v474_v15, %v474_v15 }
  0xb7   :  { %v242_v18 = vadd.f32 %v241_v17, %v240_v16 }
  0xb8   :  { %v255_v21 = vsel %vm239_vm1, %v253_v19, 0.0 }
  0xb9   :  { %243 = vadd.xlane.f32.xlu0 %v242_v18  ;;  %v256_v23 = vadd.f32 %v255_v21, %v254_v22 }
  0xc1   :  { %257 = vadd.xlane.f32.xlu0 %v256_v23 }
 0x12c   :  { %v244_v27 = vpop.xlane.xlu0 %243 }
 0x12d   :  { %v245_v29 = vrot.slane %v244_v27, 4 }
 0x12f   :  { %v246_v30 = vadd.f32 %v245_v29, %v244_v27 }
 0x131   :  { %v247_v33 = vrot.slane %v246_v30, 2 }
 0x133   :  { %v248_v34 = vadd.f32 %v247_v33, %v246_v30 }
 0x134   :  { %v258_v36 = vpop.xlane.xlu0 %257 }
 0x135   :  { %v259_v38 = vrot.slane %v258_v36, 4  ;;  %v249_v39 = vrot.slane %v248_v34, 1 }
 0x137   :  { %v260_v40 = vadd.f32 %v259_v38, %v258_v36  ;;  %v250_v41 = vadd.f32 %v249_v39, %v248_v34 }
 0x139   :  { %v261_v44 = vrot.slane %v260_v40, 2  ;;  %337 = vpush %v250_v41 }
 0x13b   :  { %v262_v45 = vadd.f32 %v261_v44, %v260_v40 }
 0x13d   :  { %v263_v48 = vrot.slane %v262_v45, 1 }
 0x13f   :  { %v264_v49 = vadd.f32 %v263_v48, %v262_v45 }
 0x141   :  { %339 = vpush %v264_v49 }
 0x142   :  { %341 = vpush %v272_v50 }
 0x143   :  { %343 = vpush %v284_v51 }
 0x16a   :  { %s338_s0 = spop %337 }
 0x172   :  { %s340_s1 = spop %339 }
 0x173   :  { %s342_s21 = spop %341 }
 0x174   :  { %s274_s22 = smul.f32 %s342_s21, %s338_s0  ;;  %s344_s25 = spop %343 }
 0x176   :  { %s275_s23 = smul.f32 458.0, %s274_s22  ;;  %v305_v1 = vstv %s274_s22 }
 0x178   :  { %s276_s24 = smul.f32 %s275_s23, %s274_s22 }
 0x17a   :  { %s277_s26 = ssub.f32 %s340_s1, %s276_s24 }
 0x17c   :  { %s286_s27 = smul.f32 %s344_s25, %s277_s26 }
 0x17e   :  { %s287_s29 = smax.f32 %s447_s28, %s286_s27 }
 0x17f   :  { %v288_v52 = vstv %s287_s29 }
 0x180   :  { %359 = vrsqrt.f32 %v288_v52  ;;  %vm296_vm4 = vcmp.eq.f32.partialorder %v288_v52, inf  ;;  %v299_v60 = vand.u32 2147483648, %v288_v52  ;;  %vm298_vm5 = vcmp.eq.f32.partialorder %v288_v52, 0.0 }
 0x186   :  { %v360_v53 = vpop.eup %359 }
 0x187   :  { %v290_v54 = vmul.f32 %v360_v53, %v288_v52 }
 0x189   :  { %v291_v55 = vmul.f32 %v360_v53, %v290_v54 }
 0x18b   :  { %v292_v56 = vmul.f32 0.5, %v291_v55 }
 0x18d   :  { %v293_v57 = vsub.f32 1.5, %v292_v56 }
 0x18f   :  { %v294_v58 = vmul.f32 %v360_v53, %v293_v57 }
 0x191   :  { %v295_v59 = vmul.f32 %v294_v58, %v288_v52 }
 0x193   :  { %v297_v61 = vsel %vm296_vm4, %v288_v52, %v295_v59 }
 0x194   :  { %v300_v62 = vsel %vm298_vm5, %v299_v60, %v297_v61 }
 0x195   :  { %345 = vpush %v300_v62 }
 0x1c6   :  { %s346_s30 = spop %345 }
 0x1c7   :  { %s302_s3 = sadd.f32 1e-06, %s346_s30 }
 0x1c9   :  { %v303_v63 = vstv %s302_s3 }
 0x1ca   :  { %361 = vrcp.f32 %v303_v63 }
 0x1d0   :  { %v362_v0 = vpop.eup %361 }
 0x1d1   :  { %v306_v2 = vmul.f32 %v362_v0, %v305_v1  ;;  %v307_v3 = vmul.f32 %v362_v0, %v472_v12  ;;  %v308_v4 = vmul.f32 %v362_v0, %v474_v15 }
 0x1d3   :  { %v310_v5 = vsub.f32 %v308_v4, %v306_v2  ;;  %v309_v6 = vsub.f32 %v307_v3, %v306_v2 }
 0x1d5   :  { %v313_v7 = vrot.slane %v310_v5, 6 }
 0x1d7   :  { %v314_v8 = vsel %vm239_vm1, %v309_v6, %v313_v7 }
 0x1d8   :  { %316 = vst [vmem:[#allocation7] sm:$0xf] %v314_v8 }
 0x1d9   :  { %327 = dma.vmem_to_hbm [thread:$0]  %s323_s5, 64, %s325_s8, [#allocation4]  }
 0x1da   :  { %439 = dma.done.wait [#allocation4], 64  }
 0x1db   :  { %440 = vsyncadd [#allocation4], 4294967232 }
 0x1dc   :  { %332 = vsyncpa [#allocation3], 1 }
 0x1dd   :  { %333 = vsyncpa [#allocation6], 1 }
 0x1de   :  { %334 = vsyncpa [#allocation4], 1 }

</bundles_post_ra>
